<compile_context>
chip_gen: v7x
topology: tpu7x:2x2x1
jax: 0.10.0
libtpu: 0.0.40
codegen_flags: <defaults>
</compile_context>

<pallas_src>
import jax
import jax.numpy as jnp
from jax.experimental import pallas as pl
from jax.experimental.pallas import tpu as pltpu

NUM_JOINTS = 21
POSE_DIM = 45
ROT_DIM = 3
TRANS_DIM = 3
BETA_DIM = 10
HAND_DIM = POSE_DIM + ROT_DIM + TRANS_DIM      # 51 per hand
FEAT_DIM = 2 * HAND_DIM                        # 102 (right | left)
JOUT_DIM = NUM_JOINTS * 3                      # 63 flattened joints per hand
PAD_DIM = 128                                  # lane-dense padded width


# ----------------------------- Pallas kernel -------------------------------

def _fused_loss_kernel(raw_p_ref, raw_g_ref, dec_p_ref, dec_g_ref,
                       w_ref, bias_ref, out_ref):
    """One batch element (full sequence) per grid step.

    raw_*   : (1, S, 102)  canonical pose sequences (data loss)
    dec_*   : (1, S, 128)  decoded [rh_pose|rh_rot|rh_trans|lh_...|0-pad] features
    w_ref   : (128, 128)   fused joint regressor (both hands; transl rows are
                           tiled eye(3); pad rows/cols are zero)
    bias_ref: (1, 1, 128)  per-batch beta contribution to the joints
    out_ref : (1, 1, 128)  lanes 0/1/2 = data / joints / vel partial SSE, rest 0
    """
    f32 = jnp.float32

    # --- data loss partial (raw canonical space) ---------------------------
    dd = raw_p_ref[0].astype(f32) - raw_g_ref[0].astype(f32)
    data_sse = jnp.sum(dd * dd)

    # --- joint regression for pred & gt (linear MANO surrogate) ------------
    w = w_ref[...]
    bias = bias_ref[0]                                          # (1, 128)
    jp = jnp.dot(dec_p_ref[0].astype(f32), w,
                 preferred_element_type=f32) + bias             # (S, 128)
    jg = jnp.dot(dec_g_ref[0].astype(f32), w,
                 preferred_element_type=f32) + bias
    d = jp - jg                                                 # pad lanes == 0
    joints_sse = jnp.sum(d * d)

    # --- velocity loss partial:  (Δpred - Δgt) == Δ(pred - gt) --------------
    dv = d[1:, :] - d[:-1, :]                                   # within-sequence
    vel_sse = jnp.sum(dv * dv)

    lane = jax.lax.broadcasted_iota(jnp.int32, out_ref.shape, 2)
    out_ref[...] = jnp.where(lane == 0, data_sse,
                             jnp.where(lane == 1, joints_sse,
                                       jnp.where(lane == 2, vel_sse, 0.0)))


def _fused_losses(raw_pred, raw_gt, dec_pred_p, dec_gt_p, w_full, beta_bias):
    B, S, F = raw_pred.shape
    P = w_full.shape[-1]
    return pl.pallas_call(
        _fused_loss_kernel,
        out_shape=jax.ShapeDtypeStruct((B, 1, P), jnp.float32),
        grid=(B,),
        in_specs=[
            pl.BlockSpec((1, S, F), lambda b: (b, 0, 0)),
            pl.BlockSpec((1, S, F), lambda b: (b, 0, 0)),
            pl.BlockSpec((1, S, P), lambda b: (b, 0, 0)),
            pl.BlockSpec((1, S, P), lambda b: (b, 0, 0)),
            pl.BlockSpec((P, P), lambda b: (0, 0)),
            pl.BlockSpec((1, 1, P), lambda b: (b, 0, 0)),
        ],
        out_specs=pl.BlockSpec((1, 1, P), lambda b: (b, 0, 0)),
        compiler_params=pltpu.CompilerParams(
            dimension_semantics=("parallel",)),
    )(raw_pred, raw_gt, dec_pred_p, dec_gt_p, w_full, beta_bias)


# ----------------------------- JAX glue -------------------------------------

def decode_uncanon(x, trans_v=False, angular_v=False, artic_v=False):
    # TODO(synk): exact uncanon_seq_batch semantics are external; modeled as a
    # per-hand channel split with cumsum integration of velocity-encoded parts.
    rh_pose, rh_rot, rh_trans = x[..., 0:45], x[..., 45:48], x[..., 48:51]
    lh_pose, lh_rot, lh_trans = x[..., 51:96], x[..., 96:99], x[..., 99:102]
    if artic_v:
        rh_pose = jnp.cumsum(rh_pose, axis=1)
        lh_pose = jnp.cumsum(lh_pose, axis=1)
    if angular_v:
        rh_rot = jnp.cumsum(rh_rot, axis=1)
        lh_rot = jnp.cumsum(lh_rot, axis=1)
    if trans_v:
        rh_trans = jnp.cumsum(rh_trans, axis=1)
        lh_trans = jnp.cumsum(lh_trans, axis=1)
    return jnp.concatenate(
        [rh_pose, rh_rot, rh_trans, lh_pose, lh_rot, lh_trans], axis=-1)


class MANOLossPallas:
    """JAX/Pallas re-implementation of MANO_Loss.forward (single fused kernel)."""

    def __init__(self, w_data=0.4, w_joints=0.3, w_vel=0.3, seed=42):
        self.w_data = jnp.float32(w_data)
        self.w_joints = jnp.float32(w_joints)
        self.w_vel = jnp.float32(w_vel)
        # TODO(synk): smplx MANO (blend shapes + LBS) cannot be loaded here; use a
        # deterministic synthetic linear joint regressor with the MANO interface
        # (pose 45 + global_orient 3 + betas 10 -> 21 joints x 3, plus transl).
        k1, k2 = jax.random.split(jax.random.PRNGKey(seed))
        in_dim = POSE_DIM + ROT_DIM + BETA_DIM                       # 58
        self.W_rh = 0.02 * jax.random.normal(k1, (in_dim, JOUT_DIM), jnp.float32)
        self.W_lh = 0.02 * jax.random.normal(k2, (in_dim, JOUT_DIM), jnp.float32)

        # Fused weight: decoded 102-d feature -> [rh joints | lh joints | 0 0],
        # translation folded in as tiled eye(3) rows, padded to 128x128 for a
        # lane-dense MXU contraction and output.
        eye3 = jnp.tile(jnp.eye(3, dtype=jnp.float32), (1, NUM_JOINTS))  # (3,63)
        w = jnp.zeros((PAD_DIM, PAD_DIM), jnp.float32)
        w = w.at[0:45, 0:63].set(self.W_rh[0:45])        # rh pose
        w = w.at[45:48, 0:63].set(self.W_rh[45:48])      # rh global orient
        w = w.at[48:51, 0:63].set(eye3)                  # rh transl (bias fold)
        w = w.at[51:96, 63:126].set(self.W_lh[0:45])     # lh pose
        w = w.at[96:99, 63:126].set(self.W_lh[45:48])    # lh global orient
        w = w.at[99:102, 63:126].set(eye3)               # lh transl (bias fold)
        self.W_full = w

    def get_joints(self, pose, beta, global_orient, transl, is_rhand=False):
        # Pure-JAX MANO surrogate using the same weights the fused kernel uses.
        # Kept for interface parity; not on the fused hot path.
        w = self.W_rh if is_rhand else self.W_lh
        bs, seqlen = pose.shape[:2]
        beta_e = jnp.broadcast_to(beta[:, None, :], (bs, seqlen, beta.shape[-1]))
        x = jnp.concatenate([pose, global_orient, beta_e], axis=-1).astype(jnp.float32)
        jts = jnp.einsum('bsf,fk->bsk', x, w) \
            + jnp.tile(transl.astype(jnp.float32), (1, 1, NUM_JOINTS))
        return jts.reshape(bs, seqlen, NUM_JOINTS, 3)

    def __call__(self, pred_hand_pose, target_hand_pose, **kwargs):
        betas = kwargs.get('betas')
        trans_v = kwargs.get('trans_v')
        angular_v = kwargs.get('angular_v')
        artic_v = kwargs.get('artic_v')

        B, S, F = pred_hand_pose.shape
        assert F == FEAT_DIM, f"expected last dim {FEAT_DIM}, got {F}"

        # Velocity decoding (cumsum glue) stays in JAX; pad to 128 lanes (zeros
        # identical for pred/gt -> no effect on any SSE).
        dec_pr = decode_uncanon(pred_hand_pose, trans_v, angular_v, artic_v)
        dec_gt = decode_uncanon(target_hand_pose, trans_v, angular_v, artic_v)
        pad = ((0, 0), (0, 0), (0, PAD_DIM - FEAT_DIM))
        dec_pr_p = jnp.pad(dec_pr, pad)
        dec_gt_p = jnp.pad(dec_gt, pad)

        # Per-batch beta contribution to joints (tiny (B,10)@(10,63) matmuls).
        rh_betas = betas[:, 0, :].astype(jnp.float32)
        lh_betas = betas[:, 1, :].astype(jnp.float32)
        beta_bias = jnp.concatenate(
            [rh_betas @ self.W_rh[48:58],
             lh_betas @ self.W_lh[48:58],
             jnp.zeros((B, PAD_DIM - 2 * JOUT_DIM), jnp.float32)],
            axis=-1).reshape(B, 1, PAD_DIM)

        partials = _fused_losses(pred_hand_pose, target_hand_pose,
                                 dec_pr_p, dec_gt_p, self.W_full, beta_bias)

        data_sse = jnp.sum(partials[:, 0, 0])
        joints_sse = jnp.sum(partials[:, 0, 1])
        vel_sse = jnp.sum(partials[:, 0, 2])

        data_loss = data_sse / jnp.float32(B * S * FEAT_DIM)
        joints_loss = joints_sse / jnp.float32(B * S * JOUT_DIM)
        vel_loss = vel_sse / jnp.float32(B * (S - 1) * JOUT_DIM)

        total_loss = (self.w_data * data_loss
                      + self.w_joints * joints_loss
                      + self.w_vel * vel_loss)
        return {'total_loss': total_loss, 'data_loss': data_loss,
                'joints_loss': joints_loss, 'vel_loss': vel_loss}


# ----------------------------- pure-JAX reference ---------------------------

def reference_losses(mod, pred, tgt, betas, trans_v, angular_v, artic_v):
    dec_p = decode_uncanon(pred, trans_v, angular_v, artic_v)
    dec_g = decode_uncanon(tgt, trans_v, angular_v, artic_v)
    rh_b, lh_b = betas[:, 0, :], betas[:, 1, :]

    def split(d):
        return (d[..., 0:45], d[..., 45:48], d[..., 48:51],
                d[..., 51:96], d[..., 96:99], d[..., 99:102])

    rp_p, rr_p, rt_p, lp_p, lr_p, lt_p = split(dec_p)
    rp_g, rr_g, rt_g, lp_g, lr_g, lt_g = split(dec_g)
    rj_p = mod.get_joints(rp_p, rh_b, rr_p, rt_p, True)
    rj_g = mod.get_joints(rp_g, rh_b, rr_g, rt_g, True)
    lj_p = mod.get_joints(lp_p, lh_b, lr_p, lt_p, False)
    lj_g = mod.get_joints(lp_g, lh_b, lr_g, lt_g, False)

    data = jnp.mean((pred.astype(jnp.float32) - tgt.astype(jnp.float32)) ** 2)
    jl = jnp.mean((rj_p - rj_g) ** 2) + jnp.mean((lj_p - lj_g) ** 2)
    vl = (jnp.mean(((rj_p[:, 1:] - rj_p[:, :-1]) - (rj_g[:, 1:] - rj_g[:, :-1])) ** 2)
          + jnp.mean(((lj_p[:, 1:] - lj_p[:, :-1]) - (lj_g[:, 1:] - lj_g[:, :-1])) ** 2))
    total = mod.w_data * data + mod.w_joints * jl + mod.w_vel * vl
    return {'total_loss': total, 'data_loss': data,
            'joints_loss': jl, 'vel_loss': vl}


# ----------------------------- demo / smoke test ----------------------------

if __name__ == "__main__":
    B, S = 2, 8
    key = jax.random.PRNGKey(0)
    k_pred, k_tgt, k_beta = jax.random.split(key, 3)

    pred_hand_pose = 0.1 * jax.random.normal(k_pred, (B, S, FEAT_DIM), jnp.float32)
    target_hand_pose = 0.1 * jax.random.normal(k_tgt, (B, S, FEAT_DIM), jnp.float32)
    betas = 0.1 * jax.random.normal(k_beta, (B, 2, BETA_DIM), jnp.float32)

    loss_mod = MANOLossPallas(w_data=0.4, w_joints=0.3, w_vel=0.3)
    out = loss_mod(pred_hand_pose, target_hand_pose,
                   betas=betas, trans_v=True, angular_v=True, artic_v=False)
    out = jax.tree_util.tree_map(jax.block_until_ready, out)

    ref = reference_losses(loss_mod, pred_hand_pose, target_hand_pose, betas,
                           True, True, False)
    for k in ('total_loss', 'data_loss', 'joints_loss', 'vel_loss'):
        assert jnp.isfinite(out[k]).item(), f"non-finite {k}"
        assert jnp.allclose(out[k], ref[k], rtol=2e-2, atol=1e-7), \
            (k, float(out[k]), float(ref[k]))
    print("KERNEL_OK")
</pallas_src>

<mosaic_0001>
module attributes {stable_mosaic.version = 11 : i64} {
  func.func @_fused_loss_kernel(%arg0: i32, %arg1: memref<1x8x102xf32, #tpu.memory_space<vmem>>, %arg2: memref<1x8x102xf32, #tpu.memory_space<vmem>>, %arg3: memref<1x8x128xf32, #tpu.memory_space<vmem>>, %arg4: memref<1x8x128xf32, #tpu.memory_space<vmem>>, %arg5: memref<128x128xf32, #tpu.memory_space<vmem>>, %arg6: memref<1x1x128xf32, #tpu.memory_space<vmem>>, %arg7: memref<1x1x128xf32, #tpu.memory_space<vmem>>) attributes {dimension_semantics = [#tpu.dimension_semantics<parallel>], iteration_bounds = array<i64: 2>, scalar_prefetch = 0 : i64, scratch_operands = 0 : i64, tpu.core_type = #tpu.core_type<tc>, window_params = [{transform_indices = @transform_0, window_bounds = array<i64: 1, 8, 102>}, {transform_indices = @transform_1, window_bounds = array<i64: 1, 8, 102>}, {transform_indices = @transform_2, window_bounds = array<i64: 1, 8, 128>}, {transform_indices = @transform_3, window_bounds = array<i64: 1, 8, 128>}, {pipeline_mode = #tpu.pipeline_mode<synchronous>, transform_indices = @transform_4, window_bounds = array<i64: 128, 128>}, {transform_indices = @transform_5, window_bounds = array<i64: 1, 1, 128>}, {transform_indices = @transform_6, window_bounds = array<i64: 1, 1, 128>}]} {
    %c0 = arith.constant 0 : index
    %c0_0 = arith.constant 0 : index
    %c0_1 = arith.constant 0 : index
    %0 = vector.load %arg1[%c0, %c0_0, %c0_1] : memref<1x8x102xf32, #tpu.memory_space<vmem>>, vector<1x8x102xf32>
    %1 = vector.shape_cast %0 : vector<1x8x102xf32> to vector<8x102xf32>
    %c0_2 = arith.constant 0 : index
    %c0_3 = arith.constant 0 : index
    %c0_4 = arith.constant 0 : index
    %2 = vector.load %arg2[%c0_2, %c0_3, %c0_4] : memref<1x8x102xf32, #tpu.memory_space<vmem>>, vector<1x8x102xf32>
    %3 = vector.shape_cast %2 : vector<1x8x102xf32> to vector<8x102xf32>
    %4 = arith.subf %1, %3 : vector<8x102xf32>
    %5 = arith.mulf %4, %4 : vector<8x102xf32>
    %6 = vector.shape_cast %5 : vector<8x102xf32> to vector<1x8x102xf32>
    %cst = arith.constant dense<0.000000e+00> : vector<1xf32>
    %7 = vector.multi_reduction <add>, %6, %cst [1, 2] : vector<1x8x102xf32> to vector<1xf32>
    %8 = vector.shape_cast %7 : vector<1xf32> to vector<1x1x1xf32>
    %9 = vector.extract %8[0, 0, 0] : f32 from vector<1x1x1xf32>
    %c0_5 = arith.constant 0 : index
    %c0_6 = arith.constant 0 : index
    %10 = vector.load %arg5[%c0_5, %c0_6] : memref<128x128xf32, #tpu.memory_space<vmem>>, vector<128x128xf32>
    %c0_7 = arith.constant 0 : index
    %c0_8 = arith.constant 0 : index
    %c0_9 = arith.constant 0 : index
    %11 = vector.load %arg6[%c0_7, %c0_8, %c0_9] : memref<1x1x128xf32, #tpu.memory_space<vmem>>, vector<1x1x128xf32>
    %12 = vector.shape_cast %11 : vector<1x1x128xf32> to vector<1x128xf32>
    %c0_10 = arith.constant 0 : index
    %c0_11 = arith.constant 0 : index
    %c0_12 = arith.constant 0 : index
    %13 = vector.load %arg3[%c0_10, %c0_11, %c0_12] : memref<1x8x128xf32, #tpu.memory_space<vmem>>, vector<1x8x128xf32>
    %14 = vector.shape_cast %13 : vector<1x8x128xf32> to vector<8x128xf32>
    %cst_13 = arith.constant dense<0.000000e+00> : vector<8x128xf32>
    %15 = tpu.matmul %14, %10, %cst_13 {dimension_numbers = #tpu.dot_dimension_numbers<[1], [0], [0], [1], [0, 0, 1, 1], [], []>} : vector<8x128xf32>, vector<128x128xf32>, vector<8x128xf32> -> vector<8x128xf32>
    %16 = vector.broadcast %12 : vector<1x128xf32> to vector<8x128xf32>
    %17 = arith.addf %15, %16 : vector<8x128xf32>
    %c0_14 = arith.constant 0 : index
    %c0_15 = arith.constant 0 : index
    %c0_16 = arith.constant 0 : index
    %18 = vector.load %arg4[%c0_14, %c0_15, %c0_16] : memref<1x8x128xf32, #tpu.memory_space<vmem>>, vector<1x8x128xf32>
    %19 = vector.shape_cast %18 : vector<1x8x128xf32> to vector<8x128xf32>
    %cst_17 = arith.constant dense<0.000000e+00> : vector<8x128xf32>
    %20 = tpu.matmul %19, %10, %cst_17 {dimension_numbers = #tpu.dot_dimension_numbers<[1], [0], [0], [1], [0, 0, 1, 1], [], []>} : vector<8x128xf32>, vector<128x128xf32>, vector<8x128xf32> -> vector<8x128xf32>
    %21 = vector.broadcast %12 : vector<1x128xf32> to vector<8x128xf32>
    %22 = arith.addf %20, %21 : vector<8x128xf32>
    %23 = arith.subf %17, %22 : vector<8x128xf32>
    %24 = arith.mulf %23, %23 : vector<8x128xf32>
    %25 = vector.shape_cast %24 : vector<8x128xf32> to vector<1x8x128xf32>
    %cst_18 = arith.constant dense<0.000000e+00> : vector<1xf32>
    %26 = vector.multi_reduction <add>, %25, %cst_18 [1, 2] : vector<1x8x128xf32> to vector<1xf32>
    %27 = vector.shape_cast %26 : vector<1xf32> to vector<1x1x1xf32>
    %28 = vector.extract %27[0, 0, 0] : f32 from vector<1x1x1xf32>
    %29 = vector.extract_strided_slice %23 {offsets = [1, 0], sizes = [7, 128], strides = [1, 1]} : vector<8x128xf32> to vector<7x128xf32>
    %30 = vector.extract_strided_slice %23 {offsets = [0, 0], sizes = [7, 128], strides = [1, 1]} : vector<8x128xf32> to vector<7x128xf32>
    %31 = arith.subf %29, %30 : vector<7x128xf32>
    %32 = arith.mulf %31, %31 : vector<7x128xf32>
    %33 = vector.shape_cast %32 : vector<7x128xf32> to vector<1x7x128xf32>
    %cst_19 = arith.constant dense<0.000000e+00> : vector<1xf32>
    %34 = vector.multi_reduction <add>, %33, %cst_19 [1, 2] : vector<1x7x128xf32> to vector<1xf32>
    %35 = vector.shape_cast %34 : vector<1xf32> to vector<1x1x1xf32>
    %36 = vector.extract %35[0, 0, 0] : f32 from vector<1x1x1xf32>
    %37 = tpu.iota {dimensions = array<i32: 2>} : vector<1x1x128xi32>
    %c0_i32 = arith.constant 0 : i32
    %38 = vector.broadcast %c0_i32 : i32 to vector<1x1x128xi32>
    %39 = arith.cmpi eq, %37, %38 : vector<1x1x128xi32>
    %c1_i32 = arith.constant 1 : i32
    %40 = vector.broadcast %c1_i32 : i32 to vector<1x1x128xi32>
    %41 = arith.cmpi eq, %37, %40 : vector<1x1x128xi32>
    %c2_i32 = arith.constant 2 : i32
    %42 = vector.broadcast %c2_i32 : i32 to vector<1x1x128xi32>
    %43 = arith.cmpi eq, %37, %42 : vector<1x1x128xi32>
    %cst_20 = arith.constant 0.000000e+00 : f32
    %44 = vector.broadcast %36 : f32 to vector<1x1x128xf32>
    %45 = vector.broadcast %cst_20 : f32 to vector<1x1x128xf32>
    %46 = arith.select %43, %44, %45 : vector<1x1x128xi1>, vector<1x1x128xf32>
    %47 = vector.broadcast %28 : f32 to vector<1x1x128xf32>
    %48 = arith.select %41, %47, %46 : vector<1x1x128xi1>, vector<1x1x128xf32>
    %49 = vector.broadcast %9 : f32 to vector<1x1x128xf32>
    %50 = arith.select %39, %49, %48 : vector<1x1x128xi1>, vector<1x1x128xf32>
    %c0_21 = arith.constant 0 : index
    %c0_22 = arith.constant 0 : index
    %c0_23 = arith.constant 0 : index
    %51 = vector.load %arg7[%c0_21, %c0_22, %c0_23] : memref<1x1x128xf32, #tpu.memory_space<vmem>>, vector<1x1x128xf32>
    tpu.vector_store %arg7[%c0_21, %c0_22, %c0_23], %50 {strides = array<i32>} : memref<1x1x128xf32, #tpu.memory_space<vmem>>, vector<1x1x128xf32>,
    return
  }
  func.func @transform_0(%arg0: i32) -> (i32, i32, i32) {
    %c0_i32 = arith.constant 0 : i32
    %c0_i32_0 = arith.constant 0 : i32
    %c0_i32_1 = arith.constant 0 : i32
    return %arg0, %c0_i32, %c0_i32_0 : i32, i32, i32
  }
  func.func @transform_1(%arg0: i32) -> (i32, i32, i32) {
    %c0_i32 = arith.constant 0 : i32
    %c0_i32_0 = arith.constant 0 : i32
    %c0_i32_1 = arith.constant 0 : i32
    return %arg0, %c0_i32, %c0_i32_0 : i32, i32, i32
  }
  func.func @transform_2(%arg0: i32) -> (i32, i32, i32) {
    %c0_i32 = arith.constant 0 : i32
    %c0_i32_0 = arith.constant 0 : i32
    %c0_i32_1 = arith.constant 0 : i32
    return %arg0, %c0_i32, %c0_i32_0 : i32, i32, i32
  }
  func.func @transform_3(%arg0: i32) -> (i32, i32, i32) {
    %c0_i32 = arith.constant 0 : i32
    %c0_i32_0 = arith.constant 0 : i32
    %c0_i32_1 = arith.constant 0 : i32
    return %arg0, %c0_i32, %c0_i32_0 : i32, i32, i32
  }
  func.func @transform_4(%arg0: i32) -> (i32, i32) {
    %c0_i32 = arith.constant 0 : i32
    %c0_i32_0 = arith.constant 0 : i32
    %c0_i32_1 = arith.constant 0 : i32
    return %c0_i32, %c0_i32_0 : i32, i32
  }
  func.func @transform_5(%arg0: i32) -> (i32, i32, i32) {
    %c0_i32 = arith.constant 0 : i32
    %c0_i32_0 = arith.constant 0 : i32
    %c0_i32_1 = arith.constant 0 : i32
    return %arg0, %c0_i32, %c0_i32_0 : i32, i32, i32
  }
  func.func @transform_6(%arg0: i32) -> (i32, i32, i32) {
    %c0_i32 = arith.constant 0 : i32
    %c0_i32_0 = arith.constant 0 : i32
    %c0_i32_1 = arith.constant 0 : i32
    return %arg0, %c0_i32, %c0_i32_0 : i32, i32, i32
  }
}

</mosaic_0001>

<bundles_post_ra>
// kernel: tpu_custom_call.1
= control target key start
LH: loop header
LB: loop body
LE: loop exit
PB: predicated region body
PF: predicated region fallthrough
CT: control target
= control target key end

     0   :  { %s1636_s0 = inlined_call_operand.hbm [shape: f32[2,8,102], index: 0, kind: input, shape index: {}]   ;;  %s1637_s1 = inlined_call_operand.hbm [shape: f32[2,8,102], index: 1, kind: input, shape index: {}]   ;;  %s1638_s2 = inlined_call_operand.hbm [shape: f32[2,8,128], index: 2, kind: input, shape index: {}]   ;;  %s1639_s3 = inlined_call_operand.hbm [shape: f32[2,8,128], index: 3, kind: input, shape index: {}]   ;;  %s1640_s4 = inlined_call_operand.hbm [shape: f32[128,128], index: 4, kind: input, shape index: {}]   ;;  %s1641_s5 = inlined_call_operand.vmem [shape: f32[2,1,128], index: 5, kind: input, shape index: {}]   ;;  %s1642_s6 = inlined_call_operand.hbm [shape: f32[2,1,128], index: 6, kind: output, shape index: {}]  }
   0x1   :  { %1652 = sst [smem:[#allocation19_spill]] %s1637_s1 }
   0x2   :  { %1653 = sst [smem:[#allocation20_spill]] %s1640_s4 }
   0x3   :  { %11 = vsyncpa [#allocation3], 0 }
   0x4   :  { %13 = vsyncpa [#allocation3 + $0x1], 0 }
   0x5   :  { %14 = vsyncpa [#allocation6], 0 }
   0x6   :  { %16 = vsyncpa [#allocation6 + $0x1], 0 }
   0x7   :  { %17 = vsyncpa [#allocation9], 0 }
   0x8   :  { %19 = vsyncpa [#allocation9 + $0x1], 0 }
   0x9   :  { %20 = vsyncpa [#allocation4], 0 }
   0xa   :  { %22 = vsyncpa [#allocation4 + $0x1], 0  ;;  %s1318_s21 = smov 0   ;;  %s1320_s22 = smov 0  }
   0xb   :  { %s1322_s23 = smov 0   ;;  %s1324_s24 = smov 0  }
   0xc LB: > { %1654 = sst [smem:[#allocation17_spill]] %s1266_s23  ;;  %s1339_s25 = sadd.s32 4294967295, %s1270_s24   ;;  %s1270_s24 = sphi %s1324_s24, %s1683_s24   ;;  %s1266_s23 = sphi %s1322_s23, %s1682_s23   ;;  %s1262_s22 = sphi %s1320_s22, %s1681_s22   ;;  %s1258_s21 = sphi %s1318_s21, %s1680_s21  }
   0xd   : > { %s787_s26 = sadd.s32 4294967294, %s1270_s24   ;;  %p48_p0 = scmp.ne.s32.totalorder %s1262_s22, %s1258_s21 }
   0xe   : > { %p1643_p1 = scmp.eq.s32.totalorder %s1339_s25, 0  ;;  %p203_p3 = scmp.eq.s32.totalorder %s787_s26, 1 }
   0xf   : > { %p788_p5 = scmp.ge.s32.totalorder %s1270_s24, 1  ;;  %p210_p7 = scmp.lt.s32.totalorder %s1270_s24, 3 }
  0x10   : > { %p1348_p4 = por %p1643_p1, %p48_p0  ;;  %p1353_p6 = por %p203_p3, %p48_p0 }
  0x11   : > { %p1358_p8 = pnand %p788_p5, %p210_p7  ;;  %s1272_s30 = smov [#allocation10]  }
  0x12   : > { %s1655_s27 = scalar_select %p1348_p4, 1, 0 }
  0x13   : > { %s1656_s28 = scalar_select %p1353_p6, 1, 0 }
  0x14   : > { %s1657_s29 = scalar_select %p1358_p8, 1, 0 }
  0x15   : > { %s222_s7 = sshll.u32 %s1272_s30, 4  ;;  %p981_p9 = pneg %p1358_p8  ;;  %s1362_s7 = int_to_ptr.vmem [resolvable:$true] %s222_s7 }
  0x16   : > { %s1374_s9 = sadd.s32 1, %s1270_s24   ;;  %s35_s10 = sadd.s32 1, %s1266_s23 }
  0x17   : > { %p1369_p11 = pnand %p981_p9, %p1643_p1  ;;  %s32_s11 = ssub.s32 %s1270_s24, %s1374_s9 }
  0x18   : > { %s1659_s4 = sld [smem:[#allocation20_spill]] }
  0x19   : > { %p1046_p13 = pneg %p1369_p11 }
  0x1e   : > { %s1044_s14 = scalar_lea.hbm %s1659_s4, 2048 }
  0x1f   : > { %p1045_p12 = scmp.ne.s32.totalorder %s1659_s4, %s1044_s14  ;;  %p1051_p5 = scmp.lt.u32.totalorder %s1044_s14, %s1659_s4 }
  0x21   : > { %p1047_p0 = pnand %p1046_p13, %p1045_p12 }
  0x23   : > { %p1048_p3 = pneg %p1047_p0 }
  0x25   : > { %p1053_p7 = pnand %p1051_p5, %p1048_p3 }
  0x27   : > { %1056 = shalt.err (!%p1053_p7)
}
  0x28   : > { %s1057_s19 = scalar_lea.vmem %s1362_s7, 2048  ;;  %p1065_p2 = scmp.lt.s32.totalorder %s1362_s7, %s1362_s7 }
  0x29   : > { %p1058_p9 = scmp.ne.s32.totalorder %s1362_s7, %s1057_s19  ;;  %p1066_p6 = scmp.lt.s32.totalorder %s1057_s19, %s1057_s19 }
  0x2b   : > { %p1060_p10 = pnand %p1058_p9, %p1046_p13  ;;  %p1067_p4 = por %p1066_p6, %p1065_p2 }
  0x2d   : > { %p1061_p1 = pneg %p1060_p10 }
  0x2f   : > { %p1068_p8 = pnand %p1067_p4, %p1061_p1 }
  0x31   : > { %1071 = shalt.err (!%p1068_p8)
}
  0x32   : > { %s1273_s20 = smov 128   ;;  %s1274_s26 = smov 8  }
  0x33   : > { %984 = dma.hbm_to_vmem [thread:$0]  (!%p1369_p11), %s1659_s4, 2048, %s1362_s7, [#allocation9], %s1273_s20, %s1273_s20, %s1274_s26  }
  0x34   : > { %p33_p1 = scmp.eq.s32.totalorder %s32_s11, 0  ;;  %p42_p2 = scmp.ne.s32.totalorder %s1266_s23, %s1262_s22 }
  0x35   : > { %p43_p4 = scmp.eq.s32.totalorder %s1270_s24, 0  ;;  %p1003_p6 = scmp.lt.s32.totalorder %s1270_s24, 2 }
  0x36   : > { %s1405_s13 = scalar_select %p33_p1, %s1266_s23, %s35_s10  }
  0x37   : > { %p44_p8 = por %p43_p4, %p42_p2  ;;  %p1661_p10 = scmp.eq.s32.totalorder %s1339_s25, 1 }
  0x38   : > { %1660 = sst [smem:[#allocation18_spill]] %s1405_s13  ;;  %s1646_s15 = sand.u32 1, %s1266_s23  }
  0x39   : > { %p1409_p12 = por %p1661_p10, %p42_p2  ;;  %s1415_s16 = sshll.u32 %s1270_s24, 7 }
  0x3a   : > { %s1419_s8 = sshll.u32 %s1646_s15, 3  ;;  %p1421_p11 = pnand %p1003_p6, %p44_p8 }
  0x3b   : > { %s1662_s14 = scalar_select %p1409_p12, 1, 0 }
  0x3c   : > { %s1663_s7 = scalar_select %p1421_p11, 1, 0 }
  0x3d   : > { %s1647_s10 = sand.u32 1, %s1270_s24   ;;  %s1664_s1 = sld [smem:[#allocation19_spill]] }
  0x3e   : > { %s258_s19 = scalar_lea.vmem [#allocation5], %s1419_s8  ;;  %s1437_s26 = scalar_lea.sflag [#allocation6], %s1647_s10 }
  0x3f   : > { %s265_s20 = sshll.u32 %s258_s19, 4  ;;  %p1443_p0 = pneg %p1421_p11  ;;  %s1433_s20 = int_to_ptr.vmem [resolvable:$true] %s265_s20 }
  0x43   : > { %s1430_s18 = scalar_lea.hbm %s1664_s1, %s1415_s16  ;;  %s1077_s19 = scalar_lea.hbm %s1664_s1, 256 }
  0x44   : > { %s1072_s30 = scalar_lea.hbm %s1430_s18, 128  ;;  %p1078_p7 = scmp.lt.u32.totalorder %s1430_s18, %s1664_s1 }
  0x45   : > { %p1073_p13 = scmp.ne.s32.totalorder %s1430_s18, %s1072_s30  ;;  %p1079_p9 = scmp.lt.u32.totalorder %s1077_s19, %s1072_s30 }
  0x46   : > { %p1081_p2 = scmp.lt.u32.totalorder %s1072_s30, %s1430_s18 }
  0x47   : > { %p1075_p3 = pnand %p1443_p0, %p1073_p13  ;;  %p1080_p1 = por %p1079_p9, %p1078_p7 }
  0x49   : > { %p1076_p5 = pneg %p1075_p3  ;;  %p1082_p4 = por %p1081_p2, %p1080_p1 }
  0x4b   : > { %p1083_p6 = pnand %p1082_p4, %p1076_p5 }
  0x4d   : > { %1086 = shalt.err (!%p1083_p6)
}
  0x4e   : > { %s1087_s10 = scalar_lea.vmem %s1433_s20, 128  ;;  %s1275_s11 = smov [#allocation5]  }
  0x4f   : > { %p1088_p8 = scmp.ne.s32.totalorder %s1433_s20, %s1087_s10  ;;  %s1092_s17 = sshll.u32 %s1275_s11, 4  ;;  %s1093_s17 = int_to_ptr.vmem [resolvable:$false] %s1092_s17 }
  0x50   : > { %s1094_s4 = scalar_lea.vmem %s1093_s17, 256  ;;  %p1095_p3 = scmp.lt.s32.totalorder %s1433_s20, %s1093_s17 }
  0x51   : > { %p1090_p10 = pnand %p1088_p8, %p1443_p0  ;;  %p1096_p12 = scmp.lt.s32.totalorder %s1094_s4, %s1087_s10 }
  0x53   : > { %p1091_p13 = pneg %p1090_p10  ;;  %p1097_p7 = por %p1096_p12, %p1095_p3 }
  0x55   : > { %p1098_p9 = pnand %p1097_p7, %p1091_p13 }
  0x57   : > { %1101 = shalt.err (!%p1098_p9)
}
  0x58   : > { %991 = dma.hbm_to_vmem [thread:$0]  (!%p1421_p11), %s1430_s18, 128, %s1433_s20, %s1437_s26  }
  0x59   : > { %s1471_s19 = scalar_lea.hbm %s1636_s0, %s1415_s16  ;;  %s240_s10 = scalar_lea.vmem [#allocation2], %s1419_s8 }
  0x5a   : > { %s247_s11 = sshll.u32 %s240_s10, 4  ;;  %s1666_s17 = sand.u32 1, %s1266_s23   ;;  %s248_s11 = int_to_ptr.vmem [resolvable:$true] %s247_s11 }
  0x5b   : > { %s237_s4 = scalar_lea.sflag [#allocation3], %s1666_s17  ;;  %s1102_s1 = scalar_lea.hbm %s1471_s19, 128 }
  0x5c   : > { %p1103_p12 = scmp.ne.s32.totalorder %s1471_s19, %s1102_s1  ;;  %s1107_s15 = scalar_lea.hbm %s1636_s0, 256 }
  0x5d   : > { %p1108_p2 = scmp.lt.u32.totalorder %s1471_s19, %s1636_s0  ;;  %p1109_p4 = scmp.lt.u32.totalorder %s1107_s15, %s1102_s1 }
  0x5e   : > { %p1105_p5 = pnand %p1103_p12, %p1443_p0  ;;  %p1111_p8 = scmp.lt.u32.totalorder %s1102_s1, %s1471_s19 }
  0x5f   : > { %p1110_p6 = por %p1109_p4, %p1108_p2 }
  0x60   : > { %p1106_p1 = pneg %p1105_p5 }
  0x61   : > { %p1112_p10 = por %p1111_p8, %p1110_p6 }
  0x63   : > { %p1113_p13 = pnand %p1112_p10, %p1106_p1 }
  0x65   : > { %1116 = shalt.err (!%p1113_p13)
}
  0x66   : > { %s1117_s10 = scalar_lea.vmem %s248_s11, 128  ;;  %s1276_s17 = smov [#allocation2]  }
  0x67   : > { %p1118_p3 = scmp.ne.s32.totalorder %s248_s11, %s1117_s10  ;;  %s1122_s23 = sshll.u32 %s1276_s17, 4  ;;  %s1123_s23 = int_to_ptr.vmem [resolvable:$false] %s1122_s23 }
  0x68   : > { %s1124_s18 = scalar_lea.vmem %s1123_s23, 256  ;;  %p1125_p12 = scmp.lt.s32.totalorder %s248_s11, %s1123_s23 }
  0x69   : > { %p1120_p7 = pnand %p1118_p3, %p1443_p0  ;;  %p1126_p5 = scmp.lt.s32.totalorder %s1124_s18, %s1117_s10 }
  0x6b   : > { %p1121_p9 = pneg %p1120_p7  ;;  %p1127_p11 = por %p1126_p5, %p1125_p12 }
  0x6d   : > { %p1128_p2 = pnand %p1127_p11, %p1121_p9 }
  0x6f   : > { %1131 = shalt.err (!%p1128_p2)
}
  0x70   : > { %p1667_p4 = scmp.ne.s32.totalorder %s1663_s7, 0  ;;  %s1497_s20 = scalar_lea.hbm %s1638_s2, %s1415_s16 }
  0x71   : > { %s276_s23 = scalar_lea.vmem [#allocation7], %s1419_s8  ;;  %s1132_s30 = scalar_lea.hbm %s1497_s20, 128 }
  0x72   : > { %988 = dma.hbm_to_vmem [thread:$0]  (!%p1667_p4), %s1471_s19, 128, %s248_s11, %s237_s4  }
  0x73   : > { %s283_s15 = sshll.u32 %s276_s23, 4  ;;  %p1133_p11 = scmp.ne.s32.totalorder %s1497_s20, %s1132_s30  ;;  %s284_s15 = int_to_ptr.vmem [resolvable:$true] %s283_s15 }
  0x74   : > { %s1137_s19 = scalar_lea.hbm %s1638_s2, 256  ;;  %p1138_p8 = scmp.lt.u32.totalorder %s1497_s20, %s1638_s2 }
  0x75   : > { %p1135_p1 = pnand %p1133_p11, %p1443_p0  ;;  %p1139_p10 = scmp.lt.u32.totalorder %s1137_s19, %s1132_s30 }
  0x76   : > { %p1141_p3 = scmp.lt.u32.totalorder %s1132_s30, %s1497_s20 }
  0x77   : > { %p1136_p6 = pneg %p1135_p1  ;;  %p1140_p13 = por %p1139_p10, %p1138_p8 }
  0x79   : > { %p1142_p7 = por %p1141_p3, %p1140_p13 }
  0x7b   : > { %p1143_p9 = pnand %p1142_p7, %p1136_p6 }
  0x7d   : > { %1146 = shalt.err (!%p1143_p9)
}
  0x7e   : > { %s1147_s18 = scalar_lea.vmem %s284_s15, 128  ;;  %s1277_s1 = smov [#allocation7]  }
  0x7f   : > { %p1148_p12 = scmp.ne.s32.totalorder %s284_s15, %s1147_s18  ;;  %s1152_s13 = sshll.u32 %s1277_s1, 4  ;;  %s1153_s13 = int_to_ptr.vmem [resolvable:$false] %s1152_s13 }
  0x80   : > { %s1154_s23 = scalar_lea.vmem %s1153_s13, 256  ;;  %p1155_p11 = scmp.lt.s32.totalorder %s284_s15, %s1153_s13 }
  0x81   : > { %p1150_p5 = pnand %p1148_p12, %p1443_p0  ;;  %p1156_p1 = scmp.lt.s32.totalorder %s1154_s23, %s1147_s18 }
  0x83   : > { %p1151_p2 = pneg %p1150_p5  ;;  %p1157_p4 = por %p1156_p1, %p1155_p11 }
  0x85   : > { %p1158_p8 = pnand %p1157_p4, %p1151_p2 }
  0x87   : > { %1161 = shalt.err (!%p1158_p8)
}
  0x88   : > { %p1668_p10 = scmp.ne.s32.totalorder %s1663_s7, 0  ;;  %s1522_s17 = scalar_lea.hbm %s1639_s3, %s1415_s16 }
  0x89   : > { %s294_s19 = scalar_lea.vmem [#allocation8], %s1419_s8  ;;  %s1669_s4 = sand.u32 1, %s1270_s24  }
  0x8a   : > { %994 = dma.hbm_to_vmem [thread:$0]  (!%p1668_p10), %s1497_s20, 128, %s284_s15, %s1437_s26  }
  0x8b   : > { %s301_s11 = sshll.u32 %s294_s19, 4  ;;  %s291_s18 = scalar_lea.sflag [#allocation9], %s1669_s4  ;;  %s302_s11 = int_to_ptr.vmem [resolvable:$true] %s301_s11 }
  0x8c   : > { %s1162_s1 = scalar_lea.hbm %s1522_s17, 128  ;;  %s1167_s15 = scalar_lea.hbm %s1639_s3, 256 }
  0x8d   : > { %p1163_p4 = scmp.ne.s32.totalorder %s1522_s17, %s1162_s1  ;;  %p1168_p3 = scmp.lt.u32.totalorder %s1522_s17, %s1639_s3 }
  0x8e   : > { %p1169_p7 = scmp.lt.u32.totalorder %s1167_s15, %s1162_s1  ;;  %p1171_p12 = scmp.lt.u32.totalorder %s1162_s1, %s1522_s17 }
  0x8f   : > { %p1165_p6 = pnand %p1163_p4, %p1443_p0 }
  0x90   : > { %p1170_p9 = por %p1169_p7, %p1168_p3 }
  0x91   : > { %p1166_p13 = pneg %p1165_p6 }
  0x92   : > { %p1172_p5 = por %p1171_p12, %p1170_p9 }
  0x94   : > { %p1173_p2 = pnand %p1172_p5, %p1166_p13 }
  0x96   : > { %1176 = shalt.err (!%p1173_p2)
}
  0x97   : > { %s1177_s8 = scalar_lea.vmem %s302_s11, 128  ;;  %s1278_s23 = smov [#allocation8]  }
  0x98   : > { %p1178_p11 = scmp.ne.s32.totalorder %s302_s11, %s1177_s8  ;;  %s1182_s30 = sshll.u32 %s1278_s23, 4  ;;  %s1183_s30 = int_to_ptr.vmem [resolvable:$false] %s1182_s30 }
  0x99   : > { %s1184_s10 = scalar_lea.vmem %s1183_s30, 256  ;;  %p1185_p4 = scmp.lt.s32.totalorder %s302_s11, %s1183_s30 }
  0x9a   : > { %p1180_p1 = pnand %p1178_p11, %p1443_p0  ;;  %p1186_p6 = scmp.lt.s32.totalorder %s1184_s10, %s1177_s8 }
  0x9c   : > { %p1181_p8 = pneg %p1180_p1  ;;  %p1187_p10 = por %p1186_p6, %p1185_p4 }
  0x9e   : > { %p1188_p3 = pnand %p1187_p10, %p1181_p8 }
  0xa0   : > { %1191 = shalt.err (!%p1188_p3)
}
  0xa1   : > { %p1670_p7 = scmp.ne.s32.totalorder %s1663_s7, 0  ;;  %p1671_p13 = scmp.ne.s32.totalorder %s1657_s29, 0 }
  0xa2   : > { %s1547_s12 = sand.u32 (!%p1671_p13), 1, %s1262_s22   ;;  %p1672_p0 = scmp.ne.s32.totalorder (!%p1671_p13), %s1655_s27, 0 }
  0xa3   : > { %997 = dma.hbm_to_vmem [thread:$0]  (!%p1670_p7), %s1522_s17, 128, %s302_s11, %s291_s18  }
  0xa4   : > { %316 = sbr.rel (%p1671_p13) target bundleno = 662 (0x296), region = 44  ;;  %s1550_s19 = sshll.u32 (!%p1671_p13), %s1547_s12, 3 }
  0xa5   : > { %s319_s4 = scalar_lea.sflag (!%p1671_p13), [#allocation3], %s1547_s12  ;;  %s322_s1 = scalar_lea.vmem (!%p1671_p13), [#allocation2], %s1550_s19 }
  0xab   : > { %1237 = dma.done.wait (%p1672_p0), %s319_s4, 128  }
  0xac   : > { %1239 = vsyncadd (%p1672_p0), %s319_s4, 4294967168  ;;  %s327_s29 = sand.u32 1, %s1339_s25   ;;  %s331_s17 = scalar_lea.vmem [#allocation5], %s1550_s19 }
  0xad   : > { %s328_s7 = scalar_lea.sflag [#allocation6], %s327_s29 }
  0xae   : > { %1241 = dma.done.wait (%p1672_p0), %s328_s7, 256  }
  0xaf   : > { %1243 = vsyncadd (%p1672_p0), %s328_s7, 4294967040  ;;  %s340_s11 = scalar_lea.vmem [#allocation7], %s1550_s19  ;;  %s346_s18 = scalar_lea.sflag [#allocation9], %s327_s29 }
  0xb0   : > { %s349_s26 = scalar_lea.vmem [#allocation8], %s1550_s19 }
  0xb1   : > { %1245 = dma.done.wait (%p1672_p0), %s346_s18, 128  }
  0xb2   : > { %1247 = vsyncadd (%p1672_p0), %s346_s18, 4294967168  ;;  %p1673_p10 = scmp.eq.s32.totalorder %s1339_s25, 0 }
  0xb4   : > { %1249 = dma.done.wait (%p1673_p10), [#allocation9], 2048   ;;  %p1674_p9 = pmov %p1673_p10 }
  0xb5   : > { %v1279_v0 = vmov 0.0|0.0   ;;  %vm1280_vm0 = vmmov 0   ;;  %v1281_v1 = vmov 0.0   ;;  %v417_v2 = vld [vmem:[#allocation10] sm:$0xff]  ;;  %v418_v3 = vld [vmem:[#allocation10 + $0x8] sm:$0xff]  ;;  %v419_v4 = vld [vmem:[#allocation10 + $0x10] sm:$0xff] }
  0xb6   : > { %1251 = vsyncadd (%p1674_p9), [#allocation9], 4294965248  ;;  %913 = vmatprep.subr.bf16.mxu0 %v1279_v0  ;;  %937 = vmatprep.subr.bf16.mxu1 %v1279_v0  ;;  %v914_v5 = vpack.c.bf16 %v418_v3, %v417_v2  ;;  %v420_v6 = vld [vmem:[#allocation10 + $0x18] sm:$0xff]  ;;  %v421_v8 = vld [vmem:[#allocation10 + $0x20] sm:$0xff]  ;;  %vm406_vm1 = vcmask 834560   ;;  %p399_p12 = scmp.lt.s32.totalorder %s1339_s25, 1 }
  0xb7   : > { %875 = vmatprep.mubr.msk.f32.mxu0 %vm1280_vm0, %v1281_v1  ;;  %910 = vmatprep.mubr.msk.f32.mxu1 %vm1280_vm0, %v1281_v1  ;;  %v917_v7 = vpack.c.bf16 %v420_v6, %v419_v4  ;;  %v422_v9 = vld [vmem:[#allocation10 + $0x28] sm:$0xff]  ;;  %v423_v11 = vld [vmem:[#allocation10 + $0x30] sm:$0xff]  ;;  %v424_v12 = vld [vmem:[#allocation10 + $0x38] sm:$0xff]  ;;  %vm601_vm2 = vcmask 1046528   ;;  %v612_v4 = vlaneseq  ;;  %s806_s23 = sshll.u32 %s1339_s25, 4  ;;  %s398_s10 = scalar_lea.vmem [#allocation11], %s1547_s12 }
  0xb8   : > { %915 = vmatpush3.bf16.msra.mxu0 %v914_v5  ;;  %939 = vmatpush3.bf16.msra.mxu1 %v914_v5  ;;  %v920_v10 = vpack.c.bf16 %v422_v9, %v421_v8  ;;  %v923_v13 = vpack.c.bf16 %v424_v12, %v423_v11  ;;  %v425_v14 = vld [vmem:[#allocation10 + $0x40] sm:$0xff]  ;;  %v426_v15 = vld [vmem:[#allocation10 + $0x48] sm:$0xff]  ;;  %v427_v17 = vld [vmem:[#allocation10 + $0x50] sm:$0xff]  ;;  %s400_s27 = scalar_select %p399_p12, %s1339_s25, 1 }
  0xb9   : > { %916 = vmatprep.subr.bf16.mxu0 %v1279_v0  ;;  %940 = vmatprep.subr.bf16.mxu1 %v1279_v0  ;;  %v926_v16 = vpack.c.bf16 %v426_v15, %v425_v14  ;;  %v428_v18 = vld [vmem:[#allocation10 + $0x58] sm:$0xff]  ;;  %v429_v20 = vld [vmem:[#allocation10 + $0x60] sm:$0xff]  ;;  %v430_v21 = vld [vmem:[#allocation10 + $0x68] sm:$0xff]  ;;  %v613_v5 = vand.u32 127, %v612_v4  ;;  %s637_s19 = sshll.u32 %s398_s10, 4  ;;  %s1592_s29 = scalar_lea.hbm %s1642_s6, %s806_s23  ;;  %s1594_s19 = int_to_ptr.vmem [resolvable:$true] %s637_s19 }
  0xba   : > { %v929_v19 = vpack.c.bf16 %v428_v18, %v427_v17  ;;  %v932_v22 = vpack.c.bf16 %v430_v21, %v429_v20  ;;  %v431_v23 = vld [vmem:[#allocation10 + $0x70] sm:$0xff]  ;;  %v432_v24 = vld [vmem:[#allocation10 + $0x78] sm:$0xff]  ;;  %v434_v26 = vld [vmem:[%s340_s11] sm:$0xff]  ;;  %s401_s16 = scalar_lea.vmem %s1641_s5, %s400_s27  ;;  %s625_s25 = scalar_lea.sflag [#allocation4], %s1547_s12 }
  0xbb   : > { %v935_v25 = vpack.c.bf16 %v432_v24, %v431_v23  ;;  %v511_v27 = vld [vmem:[%s349_s26] sm:$0xff]  ;;  %v402_v28 = vld [vmem:[%s322_s1] sm:$0xff]  ;;  %vm616_vm3 = vcmp.eq.s32.totalorder %v613_v5, 2  ;;  %vm615_vm4 = vcmp.eq.s32.totalorder %v613_v5, 1  ;;  %vm614_vm5 = vcmp.eq.s32.totalorder %v613_v5, 0  ;;  %s1192_s7 = scalar_lea.vmem %s1594_s19, 16 }
  0xbc   : > { %918 = vmatpush3.bf16.msra.mxu0 %v917_v7  ;;  %942 = vmatpush3.bf16.msra.mxu1 %v917_v7  ;;  %v403_v29 = vld [vmem:[%s331_s17] sm:$0xff]  ;;  %v805_v33 = vld [vmem:[%s401_s16] ss:$0 sm:$0xff]  ;;  %p1193_p5 = scmp.ne.s32.totalorder %s1594_s19, %s1192_s7  ;;  %p1675_p2 = scmp.ne.s32.totalorder %s1662_s14, 0 }
  0xbd   : > { %919 = vmatprep.subr.bf16.mxu0 %v1279_v0  ;;  %943 = vmatprep.subr.bf16.mxu1 %v1279_v0  ;;  %v404_v30 = vsub.f32 %v402_v28, %v403_v29  ;;  %s1282_s17 = smov [#allocation11]  }
  0xbe   : > { %p1194_p11 = pnand %p1193_p5, %p1675_p2  ;;  %s1196_s11 = sshll.u32 %s1282_s17, 4  ;;  %s1197_s11 = int_to_ptr.vmem [resolvable:$false] %s1196_s11 }
  0xbf   : > { %v405_v31 = vmul.f32 %v404_v30, %v404_v30  ;;  %s1198_s18 = scalar_lea.vmem %s1197_s11, 32  ;;  %p1199_p8 = scmp.lt.s32.totalorder %s1594_s19, %s1197_s11 }
  0xc0   : > { %921 = vmatpush3.bf16.msra.mxu0 %v920_v10  ;;  %945 = vmatpush3.bf16.msra.mxu1 %v920_v10  ;;  %p1195_p1 = pneg %p1194_p11  ;;  %p1200_p4 = scmp.lt.s32.totalorder %s1198_s18, %s1192_s7 }
  0xc1   : > { %922 = vmatprep.subr.bf16.mxu0 %v1279_v0  ;;  %946 = vmatprep.subr.bf16.mxu1 %v1279_v0  ;;  %v407_v32 = vsel %vm406_vm1, %v405_v31, 0.0 }
  0xc2   : > { %408 = vadd.xlane.f32.xlu0 %v407_v32  ;;  %p1201_p6 = por %p1200_p4, %p1199_p8 }
  0xc4   : > { %924 = vmatpush3.bf16.msra.mxu0 %v923_v13  ;;  %948 = vmatpush3.bf16.msra.mxu1 %v923_v13  ;;  %p1202_p3 = pnand %p1201_p6, %p1195_p1 }
  0xc5   : > { %925 = vmatprep.subr.bf16.mxu0 %v1279_v0  ;;  %949 = vmatprep.subr.bf16.mxu1 %v1279_v0 }
  0xc8   : > { %927 = vmatpush3.bf16.msra.mxu0 %v926_v16  ;;  %951 = vmatpush3.bf16.msra.mxu1 %v926_v16 }
  0xc9   : > { %928 = vmatprep.subr.bf16.mxu0 %v1279_v0  ;;  %952 = vmatprep.subr.bf16.mxu1 %v1279_v0 }
  0xcc   : > { %930 = vmatpush3.bf16.msra.mxu0 %v929_v19  ;;  %954 = vmatpush3.bf16.msra.mxu1 %v929_v19 }
  0xcd   : > { %931 = vmatprep.subr.bf16.mxu0 %v1279_v0  ;;  %955 = vmatprep.subr.bf16.mxu1 %v1279_v0 }
  0xd0   : > { %933 = vmatpush3.bf16.msra.mxu0 %v932_v22  ;;  %957 = vmatpush3.bf16.msra.mxu1 %v932_v22 }
  0xd1   : > { %934 = vmatprep.subr.bf16.mxu0 %v1279_v0  ;;  %958 = vmatprep.subr.bf16.mxu1 %v1279_v0 }
  0xd4   : > { %936 = vmatpush3.bf16.msra.mxu0 %v935_v25  ;;  %960 = vmatpush3.bf16.msra.mxu1 %v935_v25 }
  0xd7   : > { %876 = vmatmul.mubr.f32.vlgmr.msra.gmra.mrb[0].mxu0 %v434_v26  ;;  %911 = vmatmul.mubr.f32.vlgmr.msra.gmra.mrb[0].mxu1 %v511_v27 }
 0x14f   : > { %v409_v47 = vpop.xlane.xlu0 %408 }
 0x150   : > { %v410_v48 = vrot.slane %v409_v47, 4 }
 0x152   : > { %v411_v49 = vadd.f32 %v410_v48, %v409_v47 }
 0x154   : > { %v412_v50 = vrot.slane %v411_v49, 2 }
 0x156   : > { %v413_v51 = vadd.f32 %v412_v50, %v411_v49 }
 0x158   : > { %v414_v52 = vrot.slane %v413_v51, 1 }
 0x15a   : > { %v415_v53 = vadd.f32 %v414_v52, %v413_v51 }
 0x15c   : > { %961 = vpush %v415_v53 }
 0x18d   : > { %s962_s13 = spop %961 }
 0x18e   : > { %v621_v9 = vstv %s962_s13 }
 0x1aa   : > { %v507_v34 = vpop.f32.mrb[0].mxu0  ;;  %v578_v35 = vpop.f32.mrb[0].mxu1 }
 0x1ab   : > { %v508_v36 = vadd.f32 %v805_v33, %v507_v34  ;;  %v579_v37 = vadd.f32 %v805_v33, %v578_v35  ;;  %v877_v38 = vpop.f32.mrb[1].mxu0  ;;  %v912_v39 = vpop.f32.mrb[1].mxu1 }
 0x1ad   : > { %v582_v40 = vsub.f32 %v508_v36, %v579_v37 }
 0x1af   : > { %v583_v41 = vmul.f32 %v582_v40, %v582_v40  ;;  %v594_v42 = vrot.slane %v582_v40, 7 }
 0x1b1   : > { %584 = vadd.xlane.f32.xlu0 %v583_v41  ;;  %v596_v43 = vsub.f32 %v582_v40, %v594_v42 }
 0x1b3   : > { %v597_v44 = vmul.f32 %v596_v43, %v596_v43 }
 0x1b5   : > { %v599_v45 = vrot.slane %v597_v44, 1 }
 0x1b7   : > { %v602_v46 = vsel %vm601_vm2, %v599_v45, 0.0 }
 0x1b8   : > { %603 = vadd.xlane.f32.xlu1 %v602_v46 }
 0x23e   : > { %v585_v54 = vpop.xlane.xlu0 %584 }
 0x23f   : > { %v586_v55 = vrot.slane %v585_v54, 4 }
 0x241   : > { %v587_v56 = vadd.f32 %v586_v55, %v585_v54 }
 0x243   : > { %v588_v57 = vrot.slane %v587_v56, 2 }
 0x245   : > { %v589_v58 = vadd.f32 %v588_v57, %v587_v56  ;;  %v604_v59 = vpop.xlane.xlu1 %603 }
 0x246   : > { %v605_v60 = vrot.slane %v604_v59, 4 }
 0x247   : > { %v590_v61 = vrot.slane %v589_v58, 1 }
 0x248   : > { %v606_v62 = vadd.f32 %v605_v60, %v604_v59 }
 0x249   : > { %v591_v63 = vadd.f32 %v590_v61, %v589_v58 }
 0x24a   : > { %v607_v0 = vrot.slane %v606_v62, 2 }
 0x24b   : > { %963 = vpush %v591_v63 }
 0x24c   : > { %v608_v1 = vadd.f32 %v607_v0, %v606_v62 }
 0x24e   : > { %v609_v2 = vrot.slane %v608_v1, 1 }
 0x250   : > { %v610_v3 = vadd.f32 %v609_v2, %v608_v1 }
 0x252   : > { %965 = vpush %v610_v3 }
 0x27c   : > { %s964_s8 = spop %963 }
 0x27d   : > { %v619_v7 = vstv %s964_s8 }
 0x283   : > { %s966_s30 = spop %965 }
 0x284   : > { %v617_v6 = vstv %s966_s30 }
 0x285   : > { %v618_v8 = vsel %vm616_vm3, %v617_v6, 0.0 }
 0x286   : > { %v620_v10 = vsel %vm615_vm4, %v619_v7, %v618_v8 }
 0x287   : > { %v622_v11 = vsel %vm614_vm5, %v621_v9, %v620_v10 }
 0x288   : > { %623 = vst [vmem:[%s398_s10] sm:$0x1] %v622_v11 }
 0x289   : > { %1205 = shalt.err (!%p1202_p3)
}
 0x28a   : > { %s1206_s12 = scalar_lea.hbm %s1592_s29, 16  ;;  %s1210_s20 = scalar_lea.hbm %s1642_s6, 32 }
 0x28b   : > { %p1207_p7 = scmp.ne.s32.totalorder %s1592_s29, %s1206_s12  ;;  %p1211_p10 = scmp.lt.u32.totalorder %s1592_s29, %s1642_s6 }
 0x28c   : > { %p1212_p9 = scmp.lt.u32.totalorder %s1210_s20, %s1206_s12  ;;  %p1214_p5 = scmp.lt.u32.totalorder %s1206_s12, %s1592_s29 }
 0x28d   : > { %p1208_p13 = pnand %p1207_p7, %p1675_p2 }
 0x28e   : > { %p1213_p12 = por %p1212_p9, %p1211_p10 }
 0x28f   : > { %p1209_p0 = pneg %p1208_p13 }
 0x290   : > { %p1215_p11 = por %p1214_p5, %p1213_p12 }
 0x292   : > { %p1216_p1 = pnand %p1215_p11, %p1209_p0 }
 0x294   : > { %1219 = shalt.err (!%p1216_p1)
}
 0x295   : > { %979 = dma.vmem_to_hbm [thread:$0]  (%p1675_p2), %s1594_s19, 16, %s1592_s29, %s625_s25  }
 0x296 PF: > { %s649_s13 = sand.u32 1, %s1258_s21   ;;  %p1676_p8 = scmp.ne.s32.totalorder %s1656_s28, 0 }
 0x297   : > { %p1677_p4 = scmp.ge.s32.totalorder %s1270_s24, 2  ;;  %s650_s8 = scalar_lea.sflag [#allocation4], %s649_s13 }
 0x299   : > { %p999_p6 = pnand %p1677_p4, %p1676_p8 }
 0x29b   : > { %1253 = dma.done.wait (!%p999_p6), %s650_s8, 16  }
 0x29c   : > { %1255 = vsyncadd (!%p999_p6), %s650_s8, 4294967280  ;;  %s1678_s23 = sld [smem:[#allocation17_spill]]  ;;  %s1679_s30 = sld [smem:[#allocation18_spill]] }
 0x29d   : > { %p25_p3 = scmp.ge.s32.totalorder %s1374_s9, 4   ;;  %s1680_s21 = smov %s1262_s22 }
 0x29e   : > { %s1683_s24 = smov %s1374_s9 }
 0x29f   :  { %27 = sbr.rel (!%p25_p3) target bundleno = 12 (0xc), region = 133 }
 0x2a2   : > { %s1681_s22 = smov %s1678_s23  ;;  %s1682_s23 = smov %s1679_s30 }
 0x2a6   :  { %654 = vsyncpa [#allocation3], 1 }
 0x2a7   :  { %656 = vsyncpa [#allocation3 + $0x1], 1 }
 0x2a8   :  { %657 = vsyncpa [#allocation6], 1 }
 0x2a9   :  { %659 = vsyncpa [#allocation6 + $0x1], 1 }
 0x2aa   :  { %660 = vsyncpa [#allocation9], 1 }
 0x2ab   :  { %662 = vsyncpa [#allocation9 + $0x1], 1 }
 0x2ac   :  { %663 = vsyncpa [#allocation4], 1 }
 0x2ad   :  { %665 = vsyncpa [#allocation4 + $0x1], 1 }

</bundles_post_ra>
